<compile_context>
chip_gen: v7x
topology: tpu7x:2x2x1
jax: 0.10.0
libtpu: 0.0.40
codegen_flags: <defaults>
</compile_context>

<pallas_src>
import jax
import jax.numpy as jnp
from jax.experimental import pallas as pl
from jax.experimental.pallas import tpu as pltpu


def _cdiv(a, b):
    return (a + b - 1) // b


def _round_up(n, m):
    return ((n + m - 1) // m) * m


def logreg_kernel(x_ref, w_ref, b_ref, o_ref):
    # x_ref: (TM, F) native dtype   w_ref: (1, F) same dtype
    # b_ref: (1, 1) f32 in SMEM     o_ref: (1, TM) f32
    # Contraction on the last dim of BOTH operands == native trans_b MXU matmul
    # (no XLU transpose of the x tile); output is lane-dense (1, TM).
    y = jax.lax.dot_general(
        w_ref[...], x_ref[...],
        dimension_numbers=(((1,), (1,)), ((), ())),
        preferred_element_type=jnp.float32,
    )                                           # (1, TM) f32 accumulate
    o_ref[...] = (y + b_ref[0, 0]).astype(o_ref.dtype)


def logistic_reg_forward(x, w1, b1, w2, b2, *,
                         tile_bytes=4 * 1024 * 1024, max_tile_m=None):
    """Forward of Logistic_Reg_model: layer2(layer1(x)).

    x: (B, F), streamed in its native dtype (no wrapper-side cast).
    Torch-layout params: w1 (32, F), b1 (32,), w2 (1, 32), b2 (1,).
    Returns (B, 1) float32."""
    B, F = x.shape
    f32 = jnp.float32

    # ---- fold the two linear layers once, in f32 (exact: no activation) ----
    w_eff = w1.astype(f32).T @ w2.astype(f32).T                      # (F, 1)
    b_eff = b1.astype(f32) @ w2.astype(f32).T + b2.astype(f32)       # (1,)
    w_row = w_eff.reshape(1, F).astype(x.dtype)                      # (1, F)
    b_eff = b_eff.reshape(1, 1).astype(f32)                          # (1, 1) -> SMEM

    itemsize = jnp.dtype(x.dtype).itemsize
    row_bytes = F * itemsize

    # ---- byte-targeted tile, lane-aligned rows ------------------------------
    cap_rows = max(128, (tile_bytes // row_bytes) // 128 * 128)
    if max_tile_m is not None:                       # test knob
        cap_rows = min(cap_rows, max(8, (int(max_tile_m) // 8) * 8))
    # TODO(synk): for extreme F (row_bytes > tile_bytes) the row cap floors at
    # 128/8 rows; a production version would also tile the feature dimension.

    if B <= cap_rows:
        tile_m = B                  # single block == full array dims (no 8/128 rule)
    else:
        tile_m = cap_rows           # multiple of 128 (or 8 when knob-capped)
    num_tiles = _cdiv(B, tile_m)

    # Keep both v7x TensorCores busy: split a single large tile into two.
    if num_tiles == 1 and B >= 256:
        tile_m = _round_up(_cdiv(B, 2), 128)
        num_tiles = _cdiv(B, tile_m)

    out = pl.pallas_call(
        logreg_kernel,
        out_shape=jax.ShapeDtypeStruct((num_tiles, 1, tile_m), f32),
        grid_spec=pl.GridSpec(
            grid=(num_tiles,),
            in_specs=[
                # x tile, streamed; edge block may read past B — those rows only
                # reach output lanes that are sliced off below.
                pl.BlockSpec((tile_m, F), lambda i: (i, 0)),
                # folded weight row, VMEM-resident across the grid
                pl.BlockSpec((1, F), lambda i: (0, 0)),
                # folded bias scalar in SMEM (no (1,1) VMEM tile / broadcast)
                pl.BlockSpec(memory_space=pltpu.MemorySpace.SMEM),
            ],
            # lane-dense output row block
            out_specs=pl.BlockSpec((None, 1, tile_m), lambda i: (i, 0, 0)),
        ),
        compiler_params=pltpu.CompilerParams(
            dimension_semantics=("parallel",),          # v7x: shard tiles over 2 TCs
            vmem_limit_bytes=32 * 1024 * 1024,          # safe on v5e/v6e/v7x
        ),
        cost_estimate=pl.CostEstimate(
            flops=2 * B * F,
            transcendentals=0,
            bytes_accessed=B * F * itemsize + F * itemsize + num_tiles * tile_m * 4,
        ),
    )(x, w_row, b_eff)

    return out.reshape(num_tiles * tile_m, 1)[:B]


def init_params(key, no_input_features, hidden=32, out=1):
    # torch.nn.Linear default init: U(-1/sqrt(fan_in), 1/sqrt(fan_in)), (out, in) layout.
    k1, k2, k3, k4 = jax.random.split(key, 4)
    bound1 = 1.0 / jnp.sqrt(no_input_features)
    bound2 = 1.0 / jnp.sqrt(hidden)
    w1 = jax.random.uniform(k1, (hidden, no_input_features), jnp.float32, -bound1, bound1)
    b1 = jax.random.uniform(k2, (hidden,), jnp.float32, -bound1, bound1)
    w2 = jax.random.uniform(k3, (out, hidden), jnp.float32, -bound2, bound2)
    b2 = jax.random.uniform(k4, (out,), jnp.float32, -bound2, bound2)
    return w1, b1, w2, b2


if __name__ == "__main__":
    key = jax.random.PRNGKey(0)
    kx, kp = jax.random.split(key)

    F = 64                              # no_input_features
    w1, b1, w2, b2 = init_params(kp, F)

    def ref(xx):                        # plain-JAX reference (== the torch module)
        return (xx.astype(jnp.float32) @ w1.T + b1) @ w2.T + b2

    # Case 1: small batch, single full block, native f32 streaming
    x1 = jax.random.normal(kx, (16, F), jnp.float32)
    y1 = jax.block_until_ready(logistic_reg_forward(x1, w1, b1, w2, b2))
    assert y1.shape == (16, 1)
    assert jnp.allclose(y1, ref(x1), atol=1e-4, rtol=1e-4)

    # Case 2: ragged batch, multi-tile grid with a partial edge block (no jnp.pad)
    x2 = jax.random.normal(jax.random.PRNGKey(1), (50, F), jnp.float32)
    y2 = jax.block_until_ready(
        logistic_reg_forward(x2, w1, b1, w2, b2, max_tile_m=16))
    assert y2.shape == (50, 1)
    assert jnp.allclose(y2, ref(x2), atol=1e-4, rtol=1e-4)

    # Case 3: lane-aligned multi-tile path (tile_m multiple of 128, 2 tiles)
    x3 = jax.random.normal(jax.random.PRNGKey(2), (512, F), jnp.float32)
    y3 = jax.block_until_ready(logistic_reg_forward(x3, w1, b1, w2, b2))
    assert y3.shape == (512, 1)
    assert jnp.allclose(y3, ref(x3), atol=1e-4, rtol=1e-4)

    # Case 4: caller-provided bf16 activations stream natively (f32 accumulate)
    yb = jax.block_until_ready(
        logistic_reg_forward(x1.astype(jnp.bfloat16), w1, b1, w2, b2))
    assert jnp.allclose(yb, ref(x1), atol=5e-2, rtol=5e-2)

    print("KERNEL_OK")
</pallas_src>

<mosaic_0001>
module attributes {stable_mosaic.version = 11 : i64} {
  func.func @logreg_kernel(%arg0: i32, %arg1: memref<16x64xf32, #tpu.memory_space<vmem>>, %arg2: memref<1x64xf32, #tpu.memory_space<vmem>>, %arg3: memref<1x1xf32, #tpu.memory_space<smem>>, %arg4: memref<1x1x16xf32, #tpu.memory_space<vmem>>) attributes {dimension_semantics = [#tpu.dimension_semantics<parallel>], iteration_bounds = array<i64: 1>, scalar_prefetch = 0 : i64, scratch_operands = 0 : i64, tpu.core_type = #tpu.core_type<tc>, window_params = [{transform_indices = @transform_0, window_bounds = array<i64: 16, 64>}, {pipeline_mode = #tpu.pipeline_mode<synchronous>, transform_indices = @transform_1, window_bounds = array<i64: 1, 64>}, {transform_indices = @transform_2, window_bounds = array<i64: 1, 1>}, {transform_indices = @transform_3, window_bounds = array<i64: 1, 1, 16>}]} {
    %c0 = arith.constant 0 : index
    %c0_0 = arith.constant 0 : index
    %0 = vector.load %arg2[%c0, %c0_0] : memref<1x64xf32, #tpu.memory_space<vmem>>, vector<1x64xf32>
    %c0_1 = arith.constant 0 : index
    %c0_2 = arith.constant 0 : index
    %1 = vector.load %arg1[%c0_1, %c0_2] : memref<16x64xf32, #tpu.memory_space<vmem>>, vector<16x64xf32>
    %cst = arith.constant dense<0.000000e+00> : vector<1x16xf32>
    %2 = tpu.matmul %0, %1, %cst {dimension_numbers = #tpu.dot_dimension_numbers<[1], [1], [0], [0], [0, 0, 1, 0], [], []>} : vector<1x64xf32>, vector<16x64xf32>, vector<1x16xf32> -> vector<1x16xf32>
    %c0_3 = arith.constant 0 : index
    %c0_4 = arith.constant 0 : index
    %3 = memref.load %arg3[%c0_3, %c0_4] : memref<1x1xf32, #tpu.memory_space<smem>>
    %4 = vector.broadcast %3 : f32 to vector<1x16xf32>
    %5 = arith.addf %2, %4 : vector<1x16xf32>
    %c0_5 = arith.constant 0 : index
    %c0_6 = arith.constant 0 : index
    %c0_7 = arith.constant 0 : index
    %6 = vector.load %arg4[%c0_5, %c0_6, %c0_7] : memref<1x1x16xf32, #tpu.memory_space<vmem>>, vector<1x1x16xf32>
    %7 = vector.shape_cast %6 : vector<1x1x16xf32> to vector<1x16xf32>
    %8 = vector.shape_cast %5 : vector<1x16xf32> to vector<1x1x16xf32>
    tpu.vector_store %arg4[%c0_5, %c0_6, %c0_7], %8 {strides = array<i32>} : memref<1x1x16xf32, #tpu.memory_space<vmem>>, vector<1x1x16xf32>,
    return
  }
  func.func @transform_0(%arg0: i32) -> (i32, i32) {
    %c0_i32 = arith.constant 0 : i32
    %c0_i32_0 = arith.constant 0 : i32
    return %arg0, %c0_i32 : i32, i32
  }
  func.func @transform_1(%arg0: i32) -> (i32, i32) {
    %c0_i32 = arith.constant 0 : i32
    %c0_i32_0 = arith.constant 0 : i32
    %c0_i32_1 = arith.constant 0 : i32
    return %c0_i32, %c0_i32_0 : i32, i32
  }
  func.func @transform_2(%arg0: i32) -> (i32, i32) {
    %c0_i32 = arith.constant 0 : i32
    %c0_i32_0 = arith.constant 0 : i32
    %c0_i32_1 = arith.constant 0 : i32
    return %c0_i32, %c0_i32_0 : i32, i32
  }
  func.func @transform_3(%arg0: i32) -> (i32, i32, i32) {
    %c0_i32 = arith.constant 0 : i32
    %c0_i32_0 = arith.constant 0 : i32
    %c0_i32_1 = arith.constant 0 : i32
    return %arg0, %c0_i32, %c0_i32_0 : i32, i32, i32
  }
}

</mosaic_0001>

<bundles_post_ra>
// kernel: tpu_custom_call.1
= control target key start
LH: loop header
LB: loop body
LE: loop exit
PB: predicated region body
PF: predicated region fallthrough
CT: control target
= control target key end

     0   :  { %9 = vsyncpa [#allocation4], 0  ;;  %s261_s0 = inlined_call_operand.hbm [shape: f32[16,64], index: 0, kind: input, shape index: {}]   ;;  %s262_s1 = inlined_call_operand.vmem [shape: f32[1,64], index: 1, kind: input, shape index: {}]   ;;  %s263_s2 = inlined_call_operand.<no memory space> [shape: f32[1,1], index: 2, kind: input, shape index: {}]   ;;  %s264_s3 = inlined_call_operand.hbm [shape: f32[1,1,16], index: 3, kind: output, shape index: {}]  }
   0x1   :  { %10 = vsyncpa [#allocation5], 0  ;;  %s204_s12 = smov [#allocation3]   ;;  %s156_s16 = scalar_lea.hbm %s261_s0, 256 }
   0x2   :  { %s16_s13 = sshll.u32 %s204_s12, 4  ;;  %p157_p0 = scmp.ne.s32.totalorder %s261_s0, %s156_s16  ;;  %s17_s13 = int_to_ptr.vmem [resolvable:$true] %s16_s13 }
   0x3   :  { %p160_p1 = scmp.lt.u32.totalorder %s156_s16, %s261_s0 }
   0x5   :  { %p162_p2 = pnand %p160_p1, %p157_p0 }
   0x7   :  { %165 = shalt.err (!%p162_p2)
}
   0x8   :  { %s166_s21 = scalar_lea.vmem %s17_s13, 256  ;;  %p171_p4 = scmp.lt.s32.totalorder %s17_s13, %s17_s13 }
   0x9   :  { %p167_p3 = scmp.ne.s32.totalorder %s17_s13, %s166_s21  ;;  %p172_p5 = scmp.lt.s32.totalorder %s166_s21, %s166_s21 }
   0xb   :  { %p173_p6 = por %p172_p5, %p171_p4 }
   0xd   :  { %p174_p7 = pnand %p173_p6, %p167_p3 }
   0xf   :  { %177 = shalt.err (!%p174_p7)
}
  0x10   :  { %s205_s22 = smov 128   ;;  %s206_s23 = smov 8  }
  0x11   :  { %22 = dma.hbm_to_vmem [thread:$0]  %s261_s0, 256, %s17_s13, [#allocation4], %s205_s22, %s205_s22, %s206_s23  }
  0x12   :  { %200 = dma.done.wait [#allocation4], 256  }
  0x13   :  { %201 = vsyncadd [#allocation4], 4294967040  ;;  %v207_v0 = vmov 0.0|0.0   ;;  %vm208_vm0 = vmmov 0   ;;  %v209_v1 = vmov 0.0   ;;  %vm35_vm1 = vcmask 523264  }
  0x14   :  { %145 = vmatprep.subr.bf16.mxu0 %v207_v0  ;;  %142 = vmatprep.mubr.msk.f32.mxu0 %vm208_vm0, %v209_v1  ;;  %v31_v2 = vld [vmem:[#allocation3] sm:$0xff]  ;;  %v32_v3 = vld [vmem:[#allocation3 + $0x8] sm:$0xff]  ;;  %vm147_vm2 = vmpackc.low %vm35_vm1, %vm35_vm1  ;;  %v34_v6 = vstv %s263_s2  ;;  %s210_s29 = smov [#allocation6]   ;;  %vm115_vm3 = vcmask 122880  }
  0x15   :  { %v146_v4 = vpack.c.bf16 %v32_v3, %v31_v2  ;;  %v30_v5 = vld [vmem:[%s262_s1] sm:$0x1]  ;;  %s123_s30 = sshll.u32 %s210_s29, 4  ;;  %s124_s30 = int_to_ptr.vmem [resolvable:$true] %s123_s30 }
  0x16   :  { %s178_s4 = scalar_lea.vmem %s124_s30, 16  ;;  %s182_s5 = scalar_lea.vmem %s124_s30, 32 }
  0x17   :  { %148 = vmatpush3.bf16.xpose.msk.msra.mxu0 %vm147_vm2, %v146_v4  ;;  %p179_p8 = scmp.ne.s32.totalorder %s124_s30, %s178_s4  ;;  %p183_p9 = scmp.lt.s32.totalorder %s124_s30, %s124_s30 }
  0x18   :  { %p184_p10 = scmp.lt.s32.totalorder %s182_s5, %s178_s4 }
  0x1a   :  { %p185_p11 = por %p184_p10, %p183_p9 }
  0x1c   :  { %p186_p12 = pnand %p185_p11, %p179_p8 }
  0x1e   :  { %143 = vmatmul.mubr.msk.f32.vlgmr.msra.gmra.mrb[0].mxu0 %vm35_vm1, %v30_v5 }
  0xf1   :  { %v111_v7 = vpop.f32.mrb[0].mxu0 }
  0xf2   :  { %v112_v8 = vadd.f32 %v111_v7, %v34_v6  ;;  %v144_v9 = vpop.f32.mrb[1].mxu0 }
  0xf4   :  { %116 = vst.msk [vmem:[#allocation6] sm:$0x1] %vm115_vm3, %v112_v8 }
  0xf5   :  { %189 = shalt.err (!%p186_p12)
}
  0xf6   :  { %s190_s2 = scalar_lea.hbm %s264_s3, 16 }
  0xf7   :  { %p191_p13 = scmp.ne.s32.totalorder %s264_s3, %s190_s2  ;;  %p194_p0 = scmp.lt.u32.totalorder %s190_s2, %s264_s3 }
  0xf9   :  { %p196_p1 = pnand %p194_p0, %p191_p13 }
  0xfb   :  { %199 = shalt.err (!%p196_p1)
}
  0xfc   :  { %126 = dma.vmem_to_hbm [thread:$0]  %s124_s30, 16, %s264_s3, [#allocation5]  }
  0xfd   :  { %202 = dma.done.wait [#allocation5], 16  }
  0xfe   :  { %203 = vsyncadd [#allocation5], 4294967280 }
  0xff   :  { %130 = vsyncpa [#allocation4], 1 }
 0x100   :  { %131 = vsyncpa [#allocation5], 1 }

</bundles_post_ra>
